<compile_context>
chip_gen: v7x
topology: tpu7x:2x2x1
jax: 0.10.0
libtpu: 0.0.40
codegen_flags: <defaults>
</compile_context>

<pallas_src>
import math
import functools

import jax
import jax.numpy as jnp
from jax import lax
from jax.experimental import pallas as pl
from jax.experimental.pallas import tpu as pltpu


_INV_SQRT2 = 1.0 / math.sqrt(2.0)


def _couple_linear_kernel(x_ref, w_in_t_ref, w2_ref, b_in_ref, b_out_ref,
                          o_ref, acc_ref):
    # x_ref:      (TILE_M, dim_p)   streamed per M tile (constant across k)
    # w_in_t_ref: (dim_p, TILE_H)   streamed per hidden chunk (= in_weight.T slab)
    # w2_ref:     (TILE_H, dim_p)   streamed per hidden chunk (= alpha*W_in + W_out.T slab)
    # b_in_ref:   (1, TILE_H)       streamed per hidden chunk
    # b_out_ref:  (1, dim_p)        grid-invariant (tiny)
    # o_ref:      (TILE_M, dim_p)   written on the last hidden chunk
    # acc_ref:    (TILE_M, dim_p)   f32 accumulator scratch
    k = pl.program_id(1)

    @pl.when(k == 0)
    def _():
        acc_ref[...] = jnp.zeros_like(acc_ref)

    # First GEMM: (TILE_M, dim_p) @ (dim_p, TILE_H) -> f32 accumulation.
    # Cast x to the weight dtype so bf16 weights keep the fast MXU path.
    x = x_ref[...].astype(w_in_t_ref.dtype)
    h = jnp.dot(x, w_in_t_ref[...], preferred_element_type=jnp.float32)
    h = h + b_in_ref[...].astype(jnp.float32)

    # Exact erf-based GELU (matches torch.nn.GELU() default numerics).
    h = 0.5 * h * (1.0 + lax.erf(h * _INV_SQRT2))

    # Second GEMM with the pre-coupled weight slab; accumulate over hidden chunks.
    h = h.astype(w2_ref.dtype)
    acc_ref[...] += jnp.dot(h, w2_ref[...], preferred_element_type=jnp.float32)

    @pl.when(k == pl.num_programs(1) - 1)
    def _():
        out = acc_ref[...] + b_out_ref[...].astype(jnp.float32)
        o_ref[...] = out.astype(o_ref.dtype)


def _round_up(x, m):
    return ((x + m - 1) // m) * m


def _vmem_cap_bytes():
    try:
        return int(pltpu.get_tpu_info().vmem_capacity_bytes)
    except Exception:
        return 64 << 20  # conservative: v7x per-TensorCore capacity


@functools.partial(jax.jit, static_argnames=("tile_m", "tile_h"))
def couple_linear(x, in_weight, out_weight, alpha, in_bias, out_bias,
                  *, tile_m=256, tile_h=512):
    """x: [..., dim] -> [..., dim]  (dim == out_dim)."""
    orig_shape = x.shape
    dim = orig_shape[-1]
    hidden = in_weight.shape[0]

    m = 1
    for s in orig_shape[:-1]:
        m *= s
    x2d = x.reshape(m, dim)

    # ---- MXU / lane-friendly tiling & padding --------------------------------
    dim_p = _round_up(dim, 128)                                   # lane-dense output
    tile_m = max(128, _round_up(min(tile_m, _round_up(m, 128)), 128))
    m_pad = _round_up(m, tile_m)
    tile_h = max(128, _round_up(min(tile_h, _round_up(hidden, 128)), 128))
    hidden_p = _round_up(hidden, tile_h)

    w_dtype = in_weight.dtype
    # Hoisted once per call (read-once weights): pre-transposed first weight and
    # the coupled second weight (coupling done in f32 to avoid bf16 cancellation).
    w_in_t = in_weight.T.astype(w_dtype)                                      # (dim, hidden)
    w2 = (alpha.reshape(()).astype(jnp.float32) * in_weight.astype(jnp.float32)
          + out_weight.T.astype(jnp.float32)).astype(w_dtype)                 # (hidden, dim)

    # Zero padding is exact: padded x cols * zero weight rows contribute 0, and
    # padded hidden units give GELU(0)=0 times zero w2 rows.
    if m_pad != m or dim_p != dim:
        x2d = jnp.pad(x2d, ((0, m_pad - m), (0, dim_p - dim)))
    if dim_p != dim or hidden_p != hidden:
        w_in_t = jnp.pad(w_in_t, ((0, dim_p - dim), (0, hidden_p - hidden)))
        w2 = jnp.pad(w2, ((0, hidden_p - hidden), (0, dim_p - dim)))
    b_in_2d = jnp.pad(in_bias.reshape(1, hidden), ((0, 0), (0, hidden_p - hidden)))
    b_out_2d = jnp.pad(out_bias.reshape(1, dim), ((0, 0), (0, dim_p - dim)))

    n_m = m_pad // tile_m
    n_h = hidden_p // tile_h

    # ---- VMEM budget (double-buffered streamed blocks + scratch) -------------
    act_b = jnp.dtype(x.dtype).itemsize
    w_b = jnp.dtype(w_dtype).itemsize
    est = (2 * tile_m * dim_p * act_b          # x tile (double-buffered)
           + 2 * dim_p * tile_h * w_b          # in_weight.T slab
           + 2 * tile_h * dim_p * w_b          # coupled w2 slab
           + 2 * tile_h * 4 + 2 * dim_p * 4    # bias blocks (tiny)
           + 2 * tile_m * dim_p * act_b        # out tile
           + tile_m * dim_p * 4                # f32 accumulator scratch
           + tile_m * tile_h * 4)              # live f32 h chunk
    vmem_limit = max(int(est * 1.5) + (4 << 20), 32 << 20)
    vmem_limit = min(vmem_limit, _vmem_cap_bytes() - (8 << 20))

    out2d = pl.pallas_call(
        _couple_linear_kernel,
        out_shape=jax.ShapeDtypeStruct((m_pad, dim_p), x.dtype),
        grid_spec=pltpu.PrefetchScalarGridSpec(
            num_scalar_prefetch=0,
            grid=(n_m, n_h),                                        # hidden (reduction) last
            in_specs=[
                pl.BlockSpec((tile_m, dim_p), lambda i, k: (i, 0)),  # x tile
                pl.BlockSpec((dim_p, tile_h), lambda i, k: (0, k)),  # in_weight.T slab
                pl.BlockSpec((tile_h, dim_p), lambda i, k: (k, 0)),  # coupled w2 slab
                pl.BlockSpec((1, tile_h), lambda i, k: (0, k)),      # in_bias slab
                pl.BlockSpec((1, dim_p), lambda i, k: (0, 0)),       # out_bias (invariant)
            ],
            out_specs=pl.BlockSpec((tile_m, dim_p), lambda i, k: (i, 0)),
            scratch_shapes=[pltpu.VMEM((tile_m, dim_p), jnp.float32)],
        ),
        compiler_params=pltpu.CompilerParams(
            dimension_semantics=("parallel", "arbitrary"),
            vmem_limit_bytes=int(vmem_limit),
        ),
    )(x2d, w_in_t, w2, b_in_2d, b_out_2d)

    if m_pad != m or dim_p != dim:
        out2d = out2d[:m, :dim]
    return out2d.reshape(orig_shape)


def reference_couple_linear(x, in_weight, out_weight, alpha, in_bias, out_bias):
    h = x @ in_weight.T + in_bias
    h = 0.5 * h * (1.0 + lax.erf(h / math.sqrt(2.0)))
    w2 = alpha.reshape(()) * in_weight.T + out_weight
    return h @ w2.T + out_bias


if __name__ == "__main__":
    # Small shapes consistent with the module (dim == out_dim).  M = 2*72 = 144
    # is not a multiple of the tile size -> exercises M padding; dim=32 and
    # hidden=64 exercise the lane/128 padding path; hidden chunking uses a
    # single chunk here (it kicks in automatically for large hidden).
    batch, seq, dim, hidden = 2, 72, 32, 64

    key = jax.random.PRNGKey(0)
    k_x, k_win, k_wout, k_a, k_bin, k_bout = jax.random.split(key, 6)

    x = jax.random.normal(k_x, (batch, seq, dim), dtype=jnp.float32)
    in_weight = jax.random.normal(k_win, (hidden, dim), dtype=jnp.float32) / math.sqrt(hidden)
    out_weight = jax.random.normal(k_wout, (dim, hidden), dtype=jnp.float32) / math.sqrt(hidden)
    alpha = jax.random.normal(k_a, (1,), dtype=jnp.float32)
    in_bias = jax.random.normal(k_bin, (hidden,), dtype=jnp.float32)
    out_bias = jax.random.normal(k_bout, (dim,), dtype=jnp.float32)

    out = couple_linear(x, in_weight, out_weight, alpha, in_bias, out_bias)
    out = jax.block_until_ready(out)

    ref = reference_couple_linear(x, in_weight, out_weight, alpha, in_bias, out_bias)
    assert out.shape == x.shape
    assert jnp.allclose(out, ref, atol=1e-4, rtol=1e-4), "mismatch vs reference"

    print("KERNEL_OK")
</pallas_src>

<mosaic_0001>
module attributes {stable_mosaic.version = 11 : i64} {
  func.func @_couple_linear_kernel(%arg0: i32, %arg1: i32, %arg2: memref<256x128xf32, #tpu.memory_space<vmem>>, %arg3: memref<128x128xf32, #tpu.memory_space<vmem>>, %arg4: memref<128x128xf32, #tpu.memory_space<vmem>>, %arg5: memref<1x128xf32, #tpu.memory_space<vmem>>, %arg6: memref<1x128xf32, #tpu.memory_space<vmem>>, %arg7: memref<256x128xf32, #tpu.memory_space<vmem>>, %arg8: memref<256x128xf32, #tpu.memory_space<vmem>>) attributes {dimension_semantics = [#tpu.dimension_semantics<parallel>, #tpu.dimension_semantics<arbitrary>], iteration_bounds = array<i64: 1, 1>, scalar_prefetch = 0 : i64, scratch_operands = 1 : i64, tpu.core_type = #tpu.core_type<tc>, window_params = [{transform_indices = @transform_0, window_bounds = array<i64: 256, 128>}, {transform_indices = @transform_1, window_bounds = array<i64: 128, 128>}, {transform_indices = @transform_2, window_bounds = array<i64: 128, 128>}, {transform_indices = @transform_3, window_bounds = array<i64: 1, 128>}, {pipeline_mode = #tpu.pipeline_mode<synchronous>, transform_indices = @transform_4, window_bounds = array<i64: 1, 128>}, {transform_indices = @transform_5, window_bounds = array<i64: 256, 128>}]} {
    %c0_i32 = arith.constant 0 : i32
    %0 = arith.cmpi eq, %arg1, %c0_i32 : i32
    %1 = arith.extui %0 : i1 to i32
    %c0_i32_0 = arith.constant 0 : i32
    %2 = arith.cmpi ne, %1, %c0_i32_0 : i32
    scf.if %2 {
      %cst_18 = arith.constant 0.000000e+00 : f32
      %25 = vector.broadcast %cst_18 : f32 to vector<256x128xf32>
      %c0_19 = arith.constant 0 : index
      %c0_20 = arith.constant 0 : index
      %26 = vector.load %arg8[%c0_19, %c0_20] : memref<256x128xf32, #tpu.memory_space<vmem>>, vector<256x128xf32>
      tpu.vector_store %arg8[%c0_19, %c0_20], %25 {strides = array<i32>} : memref<256x128xf32, #tpu.memory_space<vmem>>, vector<256x128xf32>,
    } else {
    }
    %c0 = arith.constant 0 : index
    %c0_1 = arith.constant 0 : index
    %3 = vector.load %arg2[%c0, %c0_1] : memref<256x128xf32, #tpu.memory_space<vmem>>, vector<256x128xf32>
    %c0_2 = arith.constant 0 : index
    %c0_3 = arith.constant 0 : index
    %4 = vector.load %arg3[%c0_2, %c0_3] : memref<128x128xf32, #tpu.memory_space<vmem>>, vector<128x128xf32>
    %cst = arith.constant dense<0.000000e+00> : vector<256x128xf32>
    %5 = tpu.matmul %3, %4, %cst {dimension_numbers = #tpu.dot_dimension_numbers<[1], [0], [0], [1], [0, 0, 1, 1], [], []>} : vector<256x128xf32>, vector<128x128xf32>, vector<256x128xf32> -> vector<256x128xf32>
    %c0_4 = arith.constant 0 : index
    %c0_5 = arith.constant 0 : index
    %6 = vector.load %arg5[%c0_4, %c0_5] : memref<1x128xf32, #tpu.memory_space<vmem>>, vector<1x128xf32>
    %7 = vector.broadcast %6 : vector<1x128xf32> to vector<256x128xf32>
    %8 = arith.addf %5, %7 : vector<256x128xf32>
    %cst_6 = arith.constant 5.000000e-01 : f32
    %9 = vector.broadcast %cst_6 : f32 to vector<256x128xf32>
    %10 = arith.mulf %9, %8 : vector<256x128xf32>
    %cst_7 = arith.constant 0.707106769 : f32
    %11 = vector.broadcast %cst_7 : f32 to vector<256x128xf32>
    %12 = arith.mulf %8, %11 : vector<256x128xf32>
    %13 = math.erf %12 : vector<256x128xf32>
    %cst_8 = arith.constant 1.000000e+00 : f32
    %14 = vector.broadcast %cst_8 : f32 to vector<256x128xf32>
    %15 = arith.addf %14, %13 : vector<256x128xf32>
    %16 = arith.mulf %10, %15 : vector<256x128xf32>
    %c0_9 = arith.constant 0 : index
    %c0_10 = arith.constant 0 : index
    %17 = vector.load %arg8[%c0_9, %c0_10] : memref<256x128xf32, #tpu.memory_space<vmem>>, vector<256x128xf32>
    %c0_11 = arith.constant 0 : index
    %c0_12 = arith.constant 0 : index
    %18 = vector.load %arg4[%c0_11, %c0_12] : memref<128x128xf32, #tpu.memory_space<vmem>>, vector<128x128xf32>
    %cst_13 = arith.constant dense<0.000000e+00> : vector<256x128xf32>
    %19 = tpu.matmul %16, %18, %cst_13 {dimension_numbers = #tpu.dot_dimension_numbers<[1], [0], [0], [1], [0, 0, 1, 1], [], []>} : vector<256x128xf32>, vector<128x128xf32>, vector<256x128xf32> -> vector<256x128xf32>
    %20 = arith.addf %17, %19 : vector<256x128xf32>
    %c0_14 = arith.constant 0 : index
    %c0_15 = arith.constant 0 : index
    %21 = vector.load %arg8[%c0_14, %c0_15] : memref<256x128xf32, #tpu.memory_space<vmem>>, vector<256x128xf32>
    tpu.vector_store %arg8[%c0_14, %c0_15], %20 {strides = array<i32>} : memref<256x128xf32, #tpu.memory_space<vmem>>, vector<256x128xf32>,
    %c0_i32_16 = arith.constant 0 : i32
    %22 = arith.cmpi eq, %arg1, %c0_i32_16 : i32
    %23 = arith.extui %22 : i1 to i32
    %c0_i32_17 = arith.constant 0 : i32
    %24 = arith.cmpi ne, %23, %c0_i32_17 : i32
    scf.if %24 {
      %c0_18 = arith.constant 0 : index
      %c0_19 = arith.constant 0 : index
      %25 = vector.load %arg8[%c0_18, %c0_19] : memref<256x128xf32, #tpu.memory_space<vmem>>, vector<256x128xf32>
      %c0_20 = arith.constant 0 : index
      %c0_21 = arith.constant 0 : index
      %26 = vector.load %arg6[%c0_20, %c0_21] : memref<1x128xf32, #tpu.memory_space<vmem>>, vector<1x128xf32>
      %27 = vector.broadcast %26 : vector<1x128xf32> to vector<256x128xf32>
      %28 = arith.addf %25, %27 : vector<256x128xf32>
      %c0_22 = arith.constant 0 : index
      %c0_23 = arith.constant 0 : index
      %29 = vector.load %arg7[%c0_22, %c0_23] : memref<256x128xf32, #tpu.memory_space<vmem>>, vector<256x128xf32>
      tpu.vector_store %arg7[%c0_22, %c0_23], %28 {strides = array<i32>} : memref<256x128xf32, #tpu.memory_space<vmem>>, vector<256x128xf32>,
    } else {
    }
    return
  }
  func.func @transform_0(%arg0: i32, %arg1: i32) -> (i32, i32) {
    %c0_i32 = arith.constant 0 : i32
    %c0_i32_0 = arith.constant 0 : i32
    return %arg0, %c0_i32 : i32, i32
  }
  func.func @transform_1(%arg0: i32, %arg1: i32) -> (i32, i32) {
    %c0_i32 = arith.constant 0 : i32
    %c0_i32_0 = arith.constant 0 : i32
    return %c0_i32, %arg1 : i32, i32
  }
  func.func @transform_2(%arg0: i32, %arg1: i32) -> (i32, i32) {
    %c0_i32 = arith.constant 0 : i32
    %c0_i32_0 = arith.constant 0 : i32
    return %arg1, %c0_i32 : i32, i32
  }
  func.func @transform_3(%arg0: i32, %arg1: i32) -> (i32, i32) {
    %c0_i32 = arith.constant 0 : i32
    %c0_i32_0 = arith.constant 0 : i32
    return %c0_i32, %arg1 : i32, i32
  }
  func.func @transform_4(%arg0: i32, %arg1: i32) -> (i32, i32) {
    %c0_i32 = arith.constant 0 : i32
    %c0_i32_0 = arith.constant 0 : i32
    %c0_i32_1 = arith.constant 0 : i32
    return %c0_i32, %c0_i32_0 : i32, i32
  }
  func.func @transform_5(%arg0: i32, %arg1: i32) -> (i32, i32) {
    %c0_i32 = arith.constant 0 : i32
    %c0_i32_0 = arith.constant 0 : i32
    return %arg0, %c0_i32 : i32, i32
  }
}

</mosaic_0001>

<bundles_post_ra>
// kernel: couple_linear.1
= control target key start
LH: loop header
LB: loop body
LE: loop exit
PB: predicated region body
PF: predicated region fallthrough
CT: control target
= control target key end

     0   :  { %s1801_s1 = inlined_call_operand.vmem [shape: f32[128,128], index: 1, kind: input, shape index: {}]   ;;  %s1802_s0 = inlined_call_operand.vmem [shape: f32[256,128], index: 0, kind: input, shape index: {}]   ;;  %s1803_s2 = inlined_call_operand.vmem [shape: f32[128,128], index: 2, kind: input, shape index: {}]   ;;  %s1804_s3 = inlined_call_operand.vmem [shape: f32[1,128], index: 3, kind: input, shape index: {}]   ;;  %s1805_s4 = inlined_call_operand.vmem [shape: f32[1,128], index: 4, kind: input, shape index: {}]   ;;  %s1806_s5 = inlined_call_operand.vmem [shape: f32[256,128], index: 5, kind: output, shape index: {}]  }
   0x1   :  { %v88_v0 = vld [vmem:[%s1801_s1] sm:$0xff]  ;;  %v89_v1 = vld [vmem:[%s1801_s1 + $0x8] sm:$0xff]  ;;  %v90_v2 = vld [vmem:[%s1801_s1 + $0x10] sm:$0xff] }
   0x2   :  { %v1201_v3 = vpack.c.bf16 %v89_v1, %v88_v0  ;;  %v91_v4 = vld [vmem:[%s1801_s1 + $0x18] sm:$0xff]  ;;  %v92_v6 = vld [vmem:[%s1801_s1 + $0x20] sm:$0xff]  ;;  %v93_v7 = vld [vmem:[%s1801_s1 + $0x28] sm:$0xff] }
   0x3   :  { %v1205_v5 = vpack.c.bf16 %v91_v4, %v90_v2  ;;  %v1209_v8 = vpack.c.bf16 %v93_v7, %v92_v6  ;;  %v56_v9 = vld [vmem:[%s1802_s0] sm:$0xff]  ;;  %v94_v10 = vld [vmem:[%s1801_s1 + $0x30] sm:$0xff]  ;;  %v95_v11 = vld [vmem:[%s1801_s1 + $0x38] sm:$0xff] }
   0x4   :  { %1202 = vmatprep.subr.bf16.mxu0 %v1201_v3  ;;  %1073 = vmatprep.mubr.f32.mxu0 %v56_v9  ;;  %v1213_v12 = vpack.c.bf16 %v95_v11, %v94_v10  ;;  %v96_v13 = vld [vmem:[%s1801_s1 + $0x40] sm:$0xff]  ;;  %v97_v14 = vld [vmem:[%s1801_s1 + $0x48] sm:$0xff]  ;;  %v98_v16 = vld [vmem:[%s1801_s1 + $0x50] sm:$0xff] }
   0x5   :  { %1204 = vmatpush3.bf16.msra.mxu0 %v1201_v3  ;;  %v1217_v15 = vpack.c.bf16 %v97_v14, %v96_v13  ;;  %v99_v17 = vld [vmem:[%s1801_s1 + $0x58] sm:$0xff]  ;;  %v528_v18 = vld [vmem:[%s1803_s2] sm:$0xff]  ;;  %v529_v19 = vld [vmem:[%s1803_s2 + $0x8] sm:$0xff] }
   0x6   :  { %1206 = vmatprep.subr.bf16.mxu0 %v1205_v5  ;;  %v530_v20 = vld [vmem:[%s1803_s2 + $0x10] sm:$0xff]  ;;  %v1221_v21 = vpack.c.bf16 %v99_v17, %v98_v16  ;;  %v100_v22 = vld [vmem:[%s1801_s1 + $0x60] sm:$0xff]  ;;  %v1233_v23 = vpack.c.bf16 %v529_v19, %v528_v18  ;;  %v531_v24 = vld [vmem:[%s1803_s2 + $0x18] sm:$0xff] }
   0x7   :  { %v101_v25 = vld [vmem:[%s1801_s1 + $0x68] sm:$0xff]  ;;  %v1237_v26 = vpack.c.bf16 %v531_v24, %v530_v20  ;;  %v532_v27 = vld [vmem:[%s1803_s2 + $0x20] sm:$0xff]  ;;  %v102_v31 = vld [vmem:[%s1801_s1 + $0x70] sm:$0xff] }
   0x8   :  { %v533_v28 = vld [vmem:[%s1803_s2 + $0x28] sm:$0xff]  ;;  %1234 = vmatprep.subr.bf16.mxu1 %v1233_v23  ;;  %v1225_v29 = vpack.c.bf16 %v101_v25, %v100_v22  ;;  %v103_v32 = vld [vmem:[%s1801_s1 + $0x78] sm:$0xff]  ;;  %v58_v35 = vld [vmem:[%s1802_s0 + $0x10] sm:$0xff] }
   0x9   :  { %1208 = vmatpush3.bf16.msra.mxu0 %v1205_v5  ;;  %1236 = vmatpush3.bf16.msra.mxu1 %v1233_v23  ;;  %v1241_v30 = vpack.c.bf16 %v533_v28, %v532_v27  ;;  %v1229_v33 = vpack.c.bf16 %v103_v32, %v102_v31  ;;  %v57_v34 = vld [vmem:[%s1802_s0 + $0x8] sm:$0xff]  ;;  %v59_v36 = vld [vmem:[%s1802_s0 + $0x18] sm:$0xff]  ;;  %v60_v37 = vld [vmem:[%s1802_s0 + $0x20] sm:$0xff] }
   0xa   :  { %1210 = vmatprep.subr.bf16.mxu0 %v1209_v8  ;;  %1238 = vmatprep.subr.bf16.mxu1 %v1237_v26  ;;  %v61_v38 = vld [vmem:[%s1802_s0 + $0x28] sm:$0xff]  ;;  %v62_v39 = vld [vmem:[%s1802_s0 + $0x30] sm:$0xff]  ;;  %v63_v40 = vld [vmem:[%s1802_s0 + $0x38] sm:$0xff] }
   0xb   :  { %v64_v41 = vld [vmem:[%s1802_s0 + $0x40] sm:$0xff]  ;;  %v65_v42 = vld [vmem:[%s1802_s0 + $0x48] sm:$0xff]  ;;  %v66_v43 = vld [vmem:[%s1802_s0 + $0x50] sm:$0xff] }
   0xc   :  { %v67_v44 = vld [vmem:[%s1802_s0 + $0x58] sm:$0xff]  ;;  %v68_v45 = vld [vmem:[%s1802_s0 + $0x60] sm:$0xff]  ;;  %v69_v46 = vld [vmem:[%s1802_s0 + $0x68] sm:$0xff] }
   0xd   :  { %1212 = vmatpush3.bf16.msra.mxu0 %v1209_v8  ;;  %1240 = vmatpush3.bf16.msra.mxu1 %v1237_v26  ;;  %v70_v47 = vld [vmem:[%s1802_s0 + $0x70] sm:$0xff]  ;;  %v71_v48 = vld [vmem:[%s1802_s0 + $0x78] sm:$0xff]  ;;  %v72_v49 = vld [vmem:[%s1802_s0 + $0x80] sm:$0xff] }
   0xe   :  { %1214 = vmatprep.subr.bf16.mxu0 %v1213_v12  ;;  %1242 = vmatprep.subr.bf16.mxu1 %v1241_v30  ;;  %v73_v50 = vld [vmem:[%s1802_s0 + $0x88] sm:$0xff]  ;;  %v74_v51 = vld [vmem:[%s1802_s0 + $0x90] sm:$0xff]  ;;  %v75_v52 = vld [vmem:[%s1802_s0 + $0x98] sm:$0xff] }
   0xf   :  { %v76_v53 = vld [vmem:[%s1802_s0 + $0xa0] sm:$0xff]  ;;  %v77_v54 = vld [vmem:[%s1802_s0 + $0xa8] sm:$0xff]  ;;  %v78_v55 = vld [vmem:[%s1802_s0 + $0xb0] sm:$0xff] }
  0x10   :  { %v79_v56 = vld [vmem:[%s1802_s0 + $0xb8] sm:$0xff]  ;;  %v80_v57 = vld [vmem:[%s1802_s0 + $0xc0] sm:$0xff]  ;;  %v81_v58 = vld [vmem:[%s1802_s0 + $0xc8] sm:$0xff] }
  0x11   :  { %1216 = vmatpush3.bf16.msra.mxu0 %v1213_v12  ;;  %1244 = vmatpush3.bf16.msra.mxu1 %v1241_v30  ;;  %v82_v59 = vld [vmem:[%s1802_s0 + $0xd0] sm:$0xff]  ;;  %v83_v60 = vld [vmem:[%s1802_s0 + $0xd8] sm:$0xff]  ;;  %v84_v61 = vld [vmem:[%s1802_s0 + $0xe0] sm:$0xff] }
  0x12   :  { %1218 = vmatprep.subr.bf16.mxu0 %v1217_v15  ;;  %v85_v62 = vld [vmem:[%s1802_s0 + $0xe8] sm:$0xff]  ;;  %v86_v63 = vld [vmem:[%s1802_s0 + $0xf0] sm:$0xff]  ;;  %v87_v0 = vld [vmem:[%s1802_s0 + $0xf8] sm:$0xff] }
  0x13   :  { %v534_v1 = vld [vmem:[%s1803_s2 + $0x30] sm:$0xff]  ;;  %v535_v2 = vld [vmem:[%s1803_s2 + $0x38] sm:$0xff]  ;;  %v536_v4 = vld [vmem:[%s1803_s2 + $0x40] sm:$0xff] }
  0x14   :  { %v1245_v3 = vpack.c.bf16 %v535_v2, %v534_v1  ;;  %v537_v5 = vld [vmem:[%s1803_s2 + $0x48] sm:$0xff]  ;;  %v538_v7 = vld [vmem:[%s1803_s2 + $0x50] sm:$0xff]  ;;  %v539_v8 = vld [vmem:[%s1803_s2 + $0x58] sm:$0xff] }
  0x15   :  { %1220 = vmatpush3.bf16.msra.mxu0 %v1217_v15  ;;  %v1249_v6 = vpack.c.bf16 %v537_v5, %v536_v4  ;;  %v1253_v9 = vpack.c.bf16 %v539_v8, %v538_v7  ;;  %v540_v10 = vld [vmem:[%s1803_s2 + $0x60] sm:$0xff]  ;;  %v541_v11 = vld [vmem:[%s1803_s2 + $0x68] sm:$0xff]  ;;  %v542_v13 = vld [vmem:[%s1803_s2 + $0x70] sm:$0xff] }
  0x16   :  { %1222 = vmatprep.subr.bf16.mxu0 %v1221_v21  ;;  %1246 = vmatprep.subr.bf16.mxu1 %v1245_v3  ;;  %v1257_v12 = vpack.c.bf16 %v541_v11, %v540_v10  ;;  %v543_v14 = vld [vmem:[%s1803_s2 + $0x78] sm:$0xff]  ;;  %v1554_v16 = vld [vmem:[%s1804_s3] ss:$0 sm:$0xff] }
  0x17   :  { %1248 = vmatpush3.bf16.msra.mxu1 %v1245_v3  ;;  %v1261_v15 = vpack.c.bf16 %v543_v14, %v542_v13 }
  0x18   :  { %1250 = vmatprep.subr.bf16.mxu1 %v1249_v6 }
  0x19   :  { %1224 = vmatpush3.bf16.msra.mxu0 %v1221_v21 }
  0x1a   :  { %1226 = vmatprep.subr.bf16.mxu0 %v1225_v29 }
  0x1b   :  { %1252 = vmatpush3.bf16.msra.mxu1 %v1249_v6 }
  0x1c   :  { %1254 = vmatprep.subr.bf16.mxu1 %v1253_v9 }
  0x1d   :  { %1228 = vmatpush3.bf16.msra.mxu0 %v1225_v29 }
  0x1e   :  { %1230 = vmatprep.subr.bf16.mxu0 %v1229_v33 }
  0x1f   :  { %1256 = vmatpush3.bf16.msra.mxu1 %v1253_v9 }
  0x20   :  { %1258 = vmatprep.subr.bf16.mxu1 %v1257_v12 }
  0x21   :  { %1232 = vmatpush3.bf16.msra.mxu0 %v1229_v33 }
  0x23   :  { %1260 = vmatpush3.bf16.msra.mxu1 %v1257_v12 }
  0x24   :  { %1074 = vmatmul.mubr.f32.vlgmr.msra.gmra.mrb[0].mxu0 %v57_v34  ;;  %1262 = vmatprep.subr.bf16.mxu1 %v1261_v15 }
  0x25   :  { %1076 = vmatprep.mubr.f32.mxu0 %v58_v35 }
  0x27   :  { %1264 = vmatpush3.bf16.msra.mxu1 %v1261_v15 }
  0x28   :  { %1077 = vmatmul.mubr.f32.gmra.mrb[2].mxu0 %v59_v36 }
  0x29   :  { %1079 = vmatprep.mubr.f32.mxu0 %v60_v37 }
  0x2c   :  { %1080 = vmatmul.mubr.f32.gmra.mrb[4].mxu0 %v61_v38 }
  0x2d   :  { %1082 = vmatprep.mubr.f32.mxu0 %v62_v39 }
  0x30   :  { %1083 = vmatmul.mubr.f32.gmra.mrb[6].mxu0 %v63_v40 }
  0x31   :  { %1085 = vmatprep.mubr.f32.mxu0 %v64_v41 }
  0x34   :  { %1086 = vmatmul.mubr.f32.gmra.mrb[8].mxu0 %v65_v42 }
  0x35   :  { %1088 = vmatprep.mubr.f32.mxu0 %v66_v43 }
  0x38   :  { %1089 = vmatmul.mubr.f32.gmra.mrb[10].mxu0 %v67_v44 }
  0x39   :  { %1091 = vmatprep.mubr.f32.mxu0 %v68_v45 }
  0x3c   :  { %1092 = vmatmul.mubr.f32.gmra.mrb[12].mxu0 %v69_v46 }
  0x3d   :  { %1094 = vmatprep.mubr.f32.mxu0 %v70_v47 }
  0x40   :  { %1095 = vmatmul.mubr.f32.gmra.mrb[14].mxu0 %v71_v48 }
  0x41   :  { %1097 = vmatprep.mubr.f32.mxu0 %v72_v49 }
  0x44   :  { %1098 = vmatmul.mubr.f32.gmra.mrb[16].mxu0 %v73_v50 }
  0x45   :  { %1100 = vmatprep.mubr.f32.mxu0 %v74_v51 }
  0x48   :  { %1101 = vmatmul.mubr.f32.gmra.mrb[18].mxu0 %v75_v52 }
  0x49   :  { %1103 = vmatprep.mubr.f32.mxu0 %v76_v53 }
  0x4c   :  { %1104 = vmatmul.mubr.f32.gmra.mrb[20].mxu0 %v77_v54 }
  0x4d   :  { %1106 = vmatprep.mubr.f32.mxu0 %v78_v55 }
  0x50   :  { %1107 = vmatmul.mubr.f32.gmra.mrb[22].mxu0 %v79_v56 }
  0x51   :  { %1109 = vmatprep.mubr.f32.mxu0 %v80_v57 }
  0x54   :  { %1110 = vmatmul.mubr.f32.gmra.mrb[24].mxu0 %v81_v58 }
  0x55   :  { %1112 = vmatprep.mubr.f32.mxu0 %v82_v59 }
  0x58   :  { %1113 = vmatmul.mubr.f32.gmra.mrb[26].mxu0 %v83_v60 }
  0x59   :  { %1115 = vmatprep.mubr.f32.mxu0 %v84_v61 }
  0x5c   :  { %1116 = vmatmul.mubr.f32.gmra.mrb[28].mxu0 %v85_v62 }
  0x5d   :  { %1118 = vmatprep.mubr.f32.mxu0 %v86_v63 }
  0x60   :  { %1119 = vmatmul.mubr.f32.gmra.mrb[30].mxu0 %v87_v0 }
  0xf7   :  { %v1075_v17 = vpop.f32.mrb[0].mxu0 }
  0xf8   :  { %v183_v18 = vadd.f32 %v1075_v17, %v1554_v16  ;;  %v177_v19 = vpop.f32.mrb[1].mxu0 }
  0xf9   :  { %v178_v20 = vadd.f32 %v1554_v16, %v177_v19 }
  0xfa   :  { %v369_v21 = vmul.f32 0.70710677, %v183_v18  ;;  %v337_v49 = vmul.f32 0.5, %v183_v18 }
  0xfb   :  { %v368_v22 = vmul.f32 0.70710677, %v178_v20  ;;  %v1078_v23 = vpop.f32.mrb[2].mxu0  ;;  %v336_v47 = vmul.f32 0.5, %v178_v20 }
  0xfc   :  { %1265 = verf.f32 %v369_v21  ;;  %v193_v24 = vadd.f32 %v1078_v23, %v1554_v16  ;;  %v187_v25 = vpop.f32.mrb[3].mxu0 }
  0xfd   :  { %1267 = verf.f32 %v368_v22  ;;  %v188_v26 = vadd.f32 %v1554_v16, %v187_v25 }
  0xfe   :  { %v371_v27 = vmul.f32 0.70710677, %v193_v24  ;;  %v339_v63 = vmul.f32 0.5, %v193_v24 }
  0xff   :  { %v370_v28 = vmul.f32 0.70710677, %v188_v26  ;;  %v1081_v29 = vpop.f32.mrb[4].mxu0  ;;  %v338_v59 = vmul.f32 0.5, %v188_v26 }
 0x100   :  { %1269 = verf.f32 %v371_v27  ;;  %v203_v30 = vadd.f32 %v1081_v29, %v1554_v16  ;;  %v197_v31 = vpop.f32.mrb[5].mxu0 }
 0x101   :  { %1271 = verf.f32 %v370_v28  ;;  %v198_v32 = vadd.f32 %v1554_v16, %v197_v31 }
 0x102   :  { %v373_v33 = vmul.f32 0.70710677, %v203_v30  ;;  %v341_v13 = vmul.f32 0.5, %v203_v30 }
 0x103   :  { %v372_v34 = vmul.f32 0.70710677, %v198_v32  ;;  %v1084_v35 = vpop.f32.mrb[6].mxu0  ;;  %v340_v9 = vmul.f32 0.5, %v198_v32 }
 0x104   :  { %1273 = verf.f32 %v373_v33  ;;  %v1563_v36 = vadd.f32 %v1084_v35, %v1554_v16  ;;  %v207_v37 = vpop.f32.mrb[7].mxu0 }
 0x105   :  { %1275 = verf.f32 %v372_v34  ;;  %v208_v38 = vadd.f32 %v1554_v16, %v207_v37 }
 0x106   :  { %v1266_v39 = vpop.eup %1265  ;;  %v375_v40 = vmul.f32 0.70710677, %v1563_v36  ;;  %v343_v28 = vmul.f32 0.5, %v1563_v36 }
 0x107   :  { %v1268_v41 = vpop.eup %1267  ;;  %v433_v42 = vadd.f32 1.0, %v1266_v39  ;;  %v374_v43 = vmul.f32 0.70710677, %v208_v38  ;;  %v1087_v44 = vpop.f32.mrb[8].mxu0  ;;  %v342_v24 = vmul.f32 0.5, %v208_v38 }
 0x108   :  { %1277 = verf.f32 %v375_v40  ;;  %v1568_v45 = vadd.f32 %v1087_v44, %v1554_v16  ;;  %v217_v46 = vpop.f32.mrb[9].mxu0  ;;  %v432_v48 = vadd.f32 1.0, %v1268_v41 }
 0x109   :  { %1279 = verf.f32 %v374_v43  ;;  %v1571_v50 = vadd.f32 %v1554_v16, %v217_v46  ;;  %v465_v58 = vmul.f32 %v433_v42, %v337_v49 }
 0x10a   :  { %v1270_v51 = vpop.eup %1269  ;;  %v377_v52 = vmul.f32 0.70710677, %v1568_v45  ;;  %v464_v53 = vmul.f32 %v432_v48, %v336_v47  ;;  %v345_v42 = vmul.f32 0.5, %v1568_v45 }
 0x10b   :  { %v1272_v54 = vpop.eup %1271  ;;  %v435_v55 = vadd.f32 1.0, %v1270_v51  ;;  %v376_v56 = vmul.f32 0.70710677, %v1571_v50  ;;  %v1090_v57 = vpop.f32.mrb[10].mxu0  ;;  %v344_v39 = vmul.f32 0.5, %v1571_v50 }
 0x10c   :  { %v434_v60 = vadd.f32 1.0, %v1272_v54  ;;  %1281 = verf.f32 %v377_v52  ;;  %v1576_v61 = vadd.f32 %v1090_v57, %v1554_v16  ;;  %v227_v62 = vpop.f32.mrb[11].mxu0  ;;  %1153 = vmatprep.mubr.f32.mxu1 %v464_v53 }
 0x10d   :  { %1283 = verf.f32 %v376_v56  ;;  %v1579_v0 = vadd.f32 %v1554_v16, %v227_v62  ;;  %1154 = vmatmul.mubr.f32.vlgmr.msra.gmra.mrb[0].mxu1 %v465_v58  ;;  %v467_v8 = vmul.f32 %v435_v55, %v339_v63 }
 0x10e   :  { %v1274_v1 = vpop.eup %1273  ;;  %v379_v2 = vmul.f32 0.70710677, %v1576_v61  ;;  %v466_v3 = vmul.f32 %v434_v60, %v338_v59  ;;  %v347_v56 = vmul.f32 0.5, %v1576_v61 }
 0x10f   :  { %v1276_v4 = vpop.eup %1275  ;;  %v437_v5 = vadd.f32 1.0, %v1274_v1  ;;  %v378_v6 = vmul.f32 0.70710677, %v1579_v0  ;;  %v1093_v7 = vpop.f32.mrb[12].mxu0  ;;  %v346_v53 = vmul.f32 0.5, %v1579_v0 }
 0x110   :  { %v436_v10 = vadd.f32 1.0, %v1276_v4  ;;  %1285 = verf.f32 %v379_v2  ;;  %v1584_v11 = vadd.f32 %v1093_v7, %v1554_v16  ;;  %v237_v12 = vpop.f32.mrb[13].mxu0  ;;  %1156 = vmatprep.mubr.f32.mxu1 %v466_v3 }
 0x111   :  { %1287 = verf.f32 %v378_v6  ;;  %v1587_v14 = vadd.f32 %v1554_v16, %v237_v12  ;;  %1157 = vmatmul.mubr.f32.gmra.mrb[2].mxu1 %v467_v8  ;;  %v469_v23 = vmul.f32 %v437_v5, %v341_v13 }
 0x112   :  { %v1278_v15 = vpop.eup %1277  ;;  %v381_v17 = vmul.f32 0.70710677, %v1584_v11  ;;  %v468_v18 = vmul.f32 %v436_v10, %v340_v9  ;;  %v349_v6 = vmul.f32 0.5, %v1584_v11 }
 0x113   :  { %v1280_v19 = vpop.eup %1279  ;;  %v439_v20 = vadd.f32 1.0, %v1278_v15  ;;  %v380_v21 = vmul.f32 0.70710677, %v1587_v14  ;;  %v1096_v22 = vpop.f32.mrb[14].mxu0  ;;  %v348_v3 = vmul.f32 0.5, %v1587_v14 }
 0x114   :  { %v438_v25 = vadd.f32 1.0, %v1280_v19  ;;  %1289 = verf.f32 %v381_v17  ;;  %v1592_v26 = vadd.f32 %v1096_v22, %v1554_v16  ;;  %v247_v27 = vpop.f32.mrb[15].mxu0  ;;  %1159 = vmatprep.mubr.f32.mxu1 %v468_v18 }
 0x115   :  { %1291 = verf.f32 %v380_v21  ;;  %v1596_v29 = vadd.f32 %v1554_v16, %v247_v27  ;;  %1160 = vmatmul.mubr.f32.gmra.mrb[4].mxu1 %v469_v23  ;;  %v471_v38 = vmul.f32 %v439_v20, %v343_v28 }
 0x116   :  { %v1282_v30 = vpop.eup %1281  ;;  %v383_v31 = vmul.f32 0.70710677, %v1592_v26  ;;  %v470_v32 = vmul.f32 %v438_v25, %v342_v24  ;;  %v351_v21 = vmul.f32 0.5, %v1592_v26 }
 0x117   :  { %v1284_v33 = vpop.eup %1283  ;;  %v441_v34 = vadd.f32 1.0, %v1282_v30  ;;  %v382_v35 = vmul.f32 0.70710677, %v1596_v29  ;;  %v1099_v37 = vpop.f32.mrb[16].mxu0  ;;  %v350_v18 = vmul.f32 0.5, %v1596_v29 }
 0x118   :  { %v440_v40 = vadd.f32 1.0, %v1284_v33  ;;  %1293 = verf.f32 %v383_v31  ;;  %v1602_v36 = vadd.f32 %v1099_v37, %v1554_v16  ;;  %v257_v41 = vpop.f32.mrb[17].mxu0  ;;  %1162 = vmatprep.mubr.f32.mxu1 %v470_v32 }
 0x119   :  { %1295 = verf.f32 %v382_v35  ;;  %v1606_v43 = vadd.f32 %v1554_v16, %v257_v41  ;;  %1163 = vmatmul.mubr.f32.gmra.mrb[6].mxu1 %v471_v38  ;;  %v473_v52 = vmul.f32 %v441_v34, %v345_v42 }
 0x11a   :  { %v1286_v44 = vpop.eup %1285  ;;  %v385_v46 = vmul.f32 0.70710677, %v1602_v36  ;;  %v472_v47 = vmul.f32 %v440_v40, %v344_v39  ;;  %v353_v35 = vmul.f32 0.5, %v1602_v36 }
 0x11b   :  { %v1288_v48 = vpop.eup %1287  ;;  %v443_v49 = vadd.f32 1.0, %v1286_v44  ;;  %v384_v50 = vmul.f32 0.70710677, %v1606_v43  ;;  %v1102_v51 = vpop.f32.mrb[18].mxu0  ;;  %v352_v32 = vmul.f32 0.5, %v1606_v43 }
 0x11c   :  { %v442_v54 = vadd.f32 1.0, %v1288_v48  ;;  %1297 = verf.f32 %v385_v46  ;;  %v1612_v45 = vadd.f32 %v1102_v51, %v1554_v16  ;;  %v267_v55 = vpop.f32.mrb[19].mxu0  ;;  %1165 = vmatprep.mubr.f32.mxu1 %v472_v47 }
 0x11d   :  { %1299 = verf.f32 %v384_v50  ;;  %v1616_v57 = vadd.f32 %v1554_v16, %v267_v55  ;;  %1166 = vmatmul.mubr.f32.gmra.mrb[8].mxu1 %v473_v52  ;;  %v475_v2 = vmul.f32 %v443_v49, %v347_v56 }
 0x11e   :  { %v1290_v58 = vpop.eup %1289  ;;  %v387_v59 = vmul.f32 0.70710677, %v1612_v45  ;;  %v474_v60 = vmul.f32 %v442_v54, %v346_v53  ;;  %v355_v50 = vmul.f32 0.5, %v1612_v45 }
 0x11f   :  { %v1292_v62 = vpop.eup %1291  ;;  %v445_v63 = vadd.f32 1.0, %v1290_v58  ;;  %v386_v0 = vmul.f32 0.70710677, %v1616_v57  ;;  %v1105_v1 = vpop.f32.mrb[20].mxu0  ;;  %v354_v47 = vmul.f32 0.5, %v1616_v57 }
 0x120   :  { %v444_v4 = vadd.f32 1.0, %v1292_v62  ;;  %1301 = verf.f32 %v387_v59  ;;  %v1622_v61 = vadd.f32 %v1105_v1, %v1554_v16  ;;  %v277_v5 = vpop.f32.mrb[21].mxu0  ;;  %1168 = vmatprep.mubr.f32.mxu1 %v474_v60 }
 0x121   :  { %1303 = verf.f32 %v386_v0  ;;  %v1626_v7 = vadd.f32 %v1554_v16, %v277_v5  ;;  %1169 = vmatmul.mubr.f32.gmra.mrb[10].mxu1 %v475_v2  ;;  %v477_v17 = vmul.f32 %v445_v63, %v349_v6 }
 0x122   :  { %v1294_v8 = vpop.eup %1293  ;;  %v389_v9 = vmul.f32 0.70710677, %v1622_v61  ;;  %v476_v10 = vmul.f32 %v444_v4, %v348_v3  ;;  %v357_v0 = vmul.f32 0.5, %v1622_v61 }
 0x123   :  { %v1296_v12 = vpop.eup %1295  ;;  %v447_v13 = vadd.f32 1.0, %v1294_v8  ;;  %v388_v14 = vmul.f32 0.70710677, %v1626_v7  ;;  %v1108_v15 = vpop.f32.mrb[22].mxu0  ;;  %v356_v60 = vmul.f32 0.5, %v1626_v7 }
 0x124   :  { %v446_v19 = vadd.f32 1.0, %v1296_v12  ;;  %1305 = verf.f32 %v389_v9  ;;  %v1632_v11 = vadd.f32 %v1108_v15, %v1554_v16  ;;  %v287_v20 = vpop.f32.mrb[23].mxu0  ;;  %1171 = vmatprep.mubr.f32.mxu1 %v476_v10 }
 0x125   :  { %1307 = verf.f32 %v388_v14  ;;  %v1636_v22 = vadd.f32 %v1554_v16, %v287_v20  ;;  %1172 = vmatmul.mubr.f32.gmra.mrb[12].mxu1 %v477_v17  ;;  %v479_v31 = vmul.f32 %v447_v13, %v351_v21 }
 0x126   :  { %v1298_v23 = vpop.eup %1297  ;;  %v391_v24 = vmul.f32 0.70710677, %v1632_v11  ;;  %v478_v25 = vmul.f32 %v446_v19, %v350_v18  ;;  %v359_v61 = vmul.f32 0.5, %v1632_v11 }
 0x127   :  { %v1300_v27 = vpop.eup %1299  ;;  %v449_v28 = vadd.f32 1.0, %v1298_v23  ;;  %v390_v29 = vmul.f32 0.70710677, %v1636_v22  ;;  %v1111_v30 = vpop.f32.mrb[24].mxu0  ;;  %v358_v10 = vmul.f32 0.5, %v1636_v22 }
 0x128   :  { %v448_v33 = vadd.f32 1.0, %v1300_v27  ;;  %1309 = verf.f32 %v391_v24  ;;  %v1642_v26 = vadd.f32 %v1111_v30, %v1554_v16  ;;  %v297_v34 = vpop.f32.mrb[25].mxu0  ;;  %1174 = vmatprep.mubr.f32.mxu1 %v478_v25 }
 0x129   :  { %1311 = verf.f32 %v390_v29  ;;  %v1646_v37 = vadd.f32 %v1554_v16, %v297_v34  ;;  %1175 = vmatmul.mubr.f32.gmra.mrb[14].mxu1 %v479_v31  ;;  %v481_v46 = vmul.f32 %v449_v28, %v353_v35 }
 0x12a   :  { %v1302_v38 = vpop.eup %1301  ;;  %v393_v39 = vmul.f32 0.70710677, %v1642_v26  ;;  %v480_v40 = vmul.f32 %v448_v33, %v352_v32  ;;  %v361_v27 = vmul.f32 0.5, %v1642_v26 }
 0x12b   :  { %v1304_v41 = vpop.eup %1303  ;;  %v451_v42 = vadd.f32 1.0, %v1302_v38  ;;  %v392_v43 = vmul.f32 0.70710677, %v1646_v37  ;;  %v1114_v44 = vpop.f32.mrb[26].mxu0  ;;  %v360_v22 = vmul.f32 0.5, %v1646_v37 }
 0x12c   :  { %v450_v48 = vadd.f32 1.0, %v1304_v41  ;;  %1313 = verf.f32 %v393_v39  ;;  %v1652_v36 = vadd.f32 %v1114_v44, %v1554_v16  ;;  %v307_v49 = vpop.f32.mrb[27].mxu0  ;;  %1177 = vmatprep.mubr.f32.mxu1 %v480_v40 }
 0x12d   :  { %1315 = verf.f32 %v392_v43  ;;  %v308_v51 = vadd.f32 %v1554_v16, %v307_v49  ;;  %1178 = vmatmul.mubr.f32.gmra.mrb[16].mxu1 %v481_v46  ;;  %v483_v59 = vmul.f32 %v451_v42, %v355_v50 }
 0x12e   :  { %v1306_v52 = vpop.eup %1305  ;;  %v395_v53 = vmul.f32 0.70710677, %v1652_v36  ;;  %v482_v54 = vmul.f32 %v450_v48, %v354_v47  ;;  %v363_v33 = vmul.f32 0.5, %v1652_v36 }
 0x12f   :  { %v1308_v55 = vpop.eup %1307  ;;  %v453_v56 = vadd.f32 1.0, %v1306_v52  ;;  %v394_v57 = vmul.f32 0.70710677, %v308_v51  ;;  %v1117_v58 = vpop.f32.mrb[28].mxu0  ;;  %v362_v31 = vmul.f32 0.5, %v308_v51 }
 0x130   :  { %v452_v62 = vadd.f32 1.0, %v1308_v55  ;;  %1317 = verf.f32 %v395_v53  ;;  %v323_v63 = vadd.f32 %v1117_v58, %v1554_v16  ;;  %v317_v45 = vpop.f32.mrb[29].mxu0  ;;  %1180 = vmatprep.mubr.f32.mxu1 %v482_v54  ;;  %v1671_v52 = vld [vmem:[%s1805_s4] ss:$0 sm:$0xff] }
 0x131   :  { %1319 = verf.f32 %v394_v57  ;;  %v318_v1 = vadd.f32 %v1554_v16, %v317_v45  ;;  %1181 = vmatmul.mubr.f32.gmra.mrb[18].mxu1 %v483_v59  ;;  %v485_v7 = vmul.f32 %v453_v56, %v357_v0 }
 0x132   :  { %v1310_v2 = vpop.eup %1309  ;;  %v397_v3 = vmul.f32 0.70710677, %v323_v63  ;;  %v484_v4 = vmul.f32 %v452_v62, %v356_v60  ;;  %v365_v41 = vmul.f32 0.5, %v323_v63 }
 0x133   :  { %v1312_v5 = vpop.eup %1311  ;;  %v455_v6 = vadd.f32 1.0, %v1310_v2  ;;  %v396_v8 = vmul.f32 0.70710677, %v318_v1  ;;  %v1120_v9 = vpop.f32.mrb[30].mxu0  ;;  %v364_v40 = vmul.f32 0.5, %v318_v1 }
 0x134   :  { %v454_v12 = vadd.f32 1.0, %v1312_v5  ;;  %1321 = verf.f32 %v397_v3  ;;  %v333_v13 = vadd.f32 %v1120_v9, %v1554_v16  ;;  %v327_v14 = vpop.f32.mrb[31].mxu0  ;;  %1183 = vmatprep.mubr.f32.mxu1 %v484_v4 }
 0x135   :  { %1323 = verf.f32 %v396_v8  ;;  %v328_v15 = vadd.f32 %v1554_v16, %v327_v14  ;;  %1184 = vmatmul.mubr.f32.gmra.mrb[20].mxu1 %v485_v7  ;;  %v487_v24 = vmul.f32 %v455_v6, %v359_v61 }
 0x136   :  { %v1314_v17 = vpop.eup %1313  ;;  %v399_v18 = vmul.f32 0.70710677, %v333_v13  ;;  %v486_v19 = vmul.f32 %v454_v12, %v358_v10  ;;  %v367_v36 = vmul.f32 0.5, %v333_v13 }
 0x137   :  { %v1316_v20 = vpop.eup %1315  ;;  %v457_v21 = vadd.f32 1.0, %v1314_v17  ;;  %v398_v23 = vmul.f32 0.70710677, %v328_v15  ;;  %v366_v48 = vmul.f32 0.5, %v328_v15 }
 0x138   :  { %v456_v25 = vadd.f32 1.0, %v1316_v20  ;;  %1325 = verf.f32 %v399_v18  ;;  %1186 = vmatprep.mubr.f32.mxu1 %v486_v19 }
 0x139   :  { %1327 = verf.f32 %v398_v23  ;;  %1187 = vmatmul.mubr.f32.gmra.mrb[22].mxu1 %v487_v24  ;;  %v489_v30 = vmul.f32 %v457_v21, %v361_v27 }
 0x13a   :  { %v1318_v11 = vpop.eup %1317  ;;  %v488_v28 = vmul.f32 %v456_v25, %v360_v22 }
 0x13b   :  { %v1320_v16 = vpop.eup %1319  ;;  %v459_v29 = vadd.f32 1.0, %v1318_v11 }
 0x13c   :  { %v458_v32 = vadd.f32 1.0, %v1320_v16  ;;  %1189 = vmatprep.mubr.f32.mxu1 %v488_v28 }
 0x13d   :  { %1190 = vmatmul.mubr.f32.gmra.mrb[24].mxu1 %v489_v30  ;;  %v491_v39 = vmul.f32 %v459_v29, %v363_v33 }
 0x13e   :  { %v1322_v34 = vpop.eup %1321  ;;  %v490_v35 = vmul.f32 %v458_v32, %v362_v31 }
 0x13f   :  { %v1324_v37 = vpop.eup %1323  ;;  %v461_v38 = vadd.f32 1.0, %v1322_v34 }
 0x140   :  { %v460_v26 = vadd.f32 1.0, %v1324_v37  ;;  %1192 = vmatprep.mubr.f32.mxu1 %v490_v35 }
 0x141   :  { %1193 = vmatmul.mubr.f32.gmra.mrb[26].mxu1 %v491_v39  ;;  %v493_v47 = vmul.f32 %v461_v38, %v365_v41 }
 0x142   :  { %v1326_v42 = vpop.eup %1325  ;;  %v492_v43 = vmul.f32 %v460_v26, %v364_v40 }
 0x143   :  { %v1328_v44 = vpop.eup %1327  ;;  %v463_v46 = vadd.f32 1.0, %v1326_v42 }
 0x144   :  { %v462_v49 = vadd.f32 1.0, %v1328_v44  ;;  %1195 = vmatprep.mubr.f32.mxu1 %v492_v43 }
 0x145   :  { %1196 = vmatmul.mubr.f32.gmra.mrb[28].mxu1 %v493_v47  ;;  %v495_v51 = vmul.f32 %v463_v46, %v367_v36 }
 0x146   :  { %v494_v50 = vmul.f32 %v462_v49, %v366_v48 }
 0x148   :  { %1198 = vmatprep.mubr.f32.mxu1 %v494_v50 }
 0x149   :  { %1199 = vmatmul.mubr.f32.gmra.mrb[30].mxu1 %v495_v51 }
 0x1e0   :  { %v1155_v53 = vpop.f32.mrb[0].mxu1 }
 0x1e1   :  { %v876_v54 = vadd.f32 %v1155_v53, %v1671_v52  ;;  %v610_v55 = vpop.f32.mrb[1].mxu1 }
 0x1e2   :  { %v875_v56 = vadd.f32 %v1671_v52, %v610_v55 }
 0x1e3   :  { %908 = vst [vmem:[%s1806_s5 + $0x8] sm:$0xff] %v876_v54 }
 0x1e4   :  { %907 = vst [vmem:[%s1806_s5] sm:$0xff] %v875_v56  ;;  %v1158_v57 = vpop.f32.mrb[2].mxu1 }
 0x1e5   :  { %v878_v58 = vadd.f32 %v1158_v57, %v1671_v52  ;;  %v620_v59 = vpop.f32.mrb[3].mxu1 }
 0x1e6   :  { %v877_v60 = vadd.f32 %v1671_v52, %v620_v59 }
 0x1e7   :  { %910 = vst [vmem:[%s1806_s5 + $0x18] sm:$0xff] %v878_v58 }
 0x1e8   :  { %909 = vst [vmem:[%s1806_s5 + $0x10] sm:$0xff] %v877_v60  ;;  %v1161_v62 = vpop.f32.mrb[4].mxu1 }
 0x1e9   :  { %v880_v63 = vadd.f32 %v1161_v62, %v1671_v52  ;;  %v630_v45 = vpop.f32.mrb[5].mxu1 }
 0x1ea   :  { %v879_v0 = vadd.f32 %v1671_v52, %v630_v45 }
 0x1eb   :  { %912 = vst [vmem:[%s1806_s5 + $0x28] sm:$0xff] %v880_v63 }
 0x1ec   :  { %911 = vst [vmem:[%s1806_s5 + $0x20] sm:$0xff] %v879_v0  ;;  %v1164_v1 = vpop.f32.mrb[6].mxu1 }
 0x1ed   :  { %v882_v2 = vadd.f32 %v1164_v1, %v1671_v52  ;;  %v640_v3 = vpop.f32.mrb[7].mxu1 }
 0x1ee   :  { %v881_v4 = vadd.f32 %v1671_v52, %v640_v3 }
 0x1ef   :  { %914 = vst [vmem:[%s1806_s5 + $0x38] sm:$0xff] %v882_v2 }
 0x1f0   :  { %913 = vst [vmem:[%s1806_s5 + $0x30] sm:$0xff] %v881_v4  ;;  %v1167_v5 = vpop.f32.mrb[8].mxu1 }
 0x1f1   :  { %v884_v6 = vadd.f32 %v1167_v5, %v1671_v52  ;;  %v650_v8 = vpop.f32.mrb[9].mxu1 }
 0x1f2   :  { %v883_v9 = vadd.f32 %v1671_v52, %v650_v8 }
 0x1f3   :  { %916 = vst [vmem:[%s1806_s5 + $0x48] sm:$0xff] %v884_v6 }
 0x1f4   :  { %915 = vst [vmem:[%s1806_s5 + $0x40] sm:$0xff] %v883_v9  ;;  %v1170_v7 = vpop.f32.mrb[10].mxu1 }
 0x1f5   :  { %v886_v10 = vadd.f32 %v1170_v7, %v1671_v52  ;;  %v660_v12 = vpop.f32.mrb[11].mxu1 }
 0x1f6   :  { %v885_v13 = vadd.f32 %v1671_v52, %v660_v12 }
 0x1f7   :  { %918 = vst [vmem:[%s1806_s5 + $0x58] sm:$0xff] %v886_v10 }
 0x1f8   :  { %917 = vst [vmem:[%s1806_s5 + $0x50] sm:$0xff] %v885_v13  ;;  %v1173_v14 = vpop.f32.mrb[12].mxu1 }
 0x1f9   :  { %v888_v61 = vadd.f32 %v1173_v14, %v1671_v52  ;;  %v670_v15 = vpop.f32.mrb[13].mxu1 }
 0x1fa   :  { %v887_v17 = vadd.f32 %v1671_v52, %v670_v15 }
 0x1fb   :  { %920 = vst [vmem:[%s1806_s5 + $0x68] sm:$0xff] %v888_v61 }
 0x1fc   :  { %919 = vst [vmem:[%s1806_s5 + $0x60] sm:$0xff] %v887_v17  ;;  %v1176_v18 = vpop.f32.mrb[14].mxu1 }
 0x1fd   :  { %v890_v19 = vadd.f32 %v1176_v18, %v1671_v52  ;;  %v680_v20 = vpop.f32.mrb[15].mxu1 }
 0x1fe   :  { %v889_v21 = vadd.f32 %v1671_v52, %v680_v20 }
 0x1ff   :  { %922 = vst [vmem:[%s1806_s5 + $0x78] sm:$0xff] %v890_v19 }
 0x200   :  { %921 = vst [vmem:[%s1806_s5 + $0x70] sm:$0xff] %v889_v21  ;;  %v1179_v23 = vpop.f32.mrb[16].mxu1 }
 0x201   :  { %v892_v24 = vadd.f32 %v1179_v23, %v1671_v52  ;;  %v690_v22 = vpop.f32.mrb[17].mxu1 }
 0x202   :  { %v891_v25 = vadd.f32 %v1671_v52, %v690_v22 }
 0x203   :  { %924 = vst [vmem:[%s1806_s5 + $0x88] sm:$0xff] %v892_v24 }
 0x204   :  { %923 = vst [vmem:[%s1806_s5 + $0x80] sm:$0xff] %v891_v25  ;;  %v1182_v27 = vpop.f32.mrb[18].mxu1 }
 0x205   :  { %v894_v11 = vadd.f32 %v1182_v27, %v1671_v52  ;;  %v700_v28 = vpop.f32.mrb[19].mxu1 }
 0x206   :  { %v893_v16 = vadd.f32 %v1671_v52, %v700_v28 }
 0x207   :  { %926 = vst [vmem:[%s1806_s5 + $0x98] sm:$0xff] %v894_v11 }
 0x208   :  { %925 = vst [vmem:[%s1806_s5 + $0x90] sm:$0xff] %v893_v16  ;;  %v1185_v29 = vpop.f32.mrb[20].mxu1 }
 0x209   :  { %v896_v30 = vadd.f32 %v1185_v29, %v1671_v52  ;;  %v710_v31 = vpop.f32.mrb[21].mxu1 }
 0x20a   :  { %v895_v32 = vadd.f32 %v1671_v52, %v710_v31 }
 0x20b   :  { %928 = vst [vmem:[%s1806_s5 + $0xa8] sm:$0xff] %v896_v30 }
 0x20c   :  { %927 = vst [vmem:[%s1806_s5 + $0xa0] sm:$0xff] %v895_v32  ;;  %v1188_v33 = vpop.f32.mrb[22].mxu1 }
 0x20d   :  { %v898_v34 = vadd.f32 %v1188_v33, %v1671_v52  ;;  %v720_v35 = vpop.f32.mrb[23].mxu1 }
 0x20e   :  { %v897_v37 = vadd.f32 %v1671_v52, %v720_v35 }
 0x20f   :  { %930 = vst [vmem:[%s1806_s5 + $0xb8] sm:$0xff] %v898_v34 }
 0x210   :  { %929 = vst [vmem:[%s1806_s5 + $0xb0] sm:$0xff] %v897_v37  ;;  %v1191_v38 = vpop.f32.mrb[24].mxu1 }
 0x211   :  { %v900_v39 = vadd.f32 %v1191_v38, %v1671_v52  ;;  %v730_v40 = vpop.f32.mrb[25].mxu1 }
 0x212   :  { %v899_v26 = vadd.f32 %v1671_v52, %v730_v40 }
 0x213   :  { %932 = vst [vmem:[%s1806_s5 + $0xc8] sm:$0xff] %v900_v39 }
 0x214   :  { %931 = vst [vmem:[%s1806_s5 + $0xc0] sm:$0xff] %v899_v26  ;;  %v1194_v41 = vpop.f32.mrb[26].mxu1 }
 0x215   :  { %v902_v42 = vadd.f32 %v1194_v41, %v1671_v52  ;;  %v740_v43 = vpop.f32.mrb[27].mxu1 }
 0x216   :  { %v901_v44 = vadd.f32 %v1671_v52, %v740_v43 }
 0x217   :  { %934 = vst [vmem:[%s1806_s5 + $0xd8] sm:$0xff] %v902_v42 }
 0x218   :  { %933 = vst [vmem:[%s1806_s5 + $0xd0] sm:$0xff] %v901_v44  ;;  %v1197_v46 = vpop.f32.mrb[28].mxu1 }
 0x219   :  { %v904_v47 = vadd.f32 %v1197_v46, %v1671_v52  ;;  %v750_v48 = vpop.f32.mrb[29].mxu1 }
 0x21a   :  { %v903_v49 = vadd.f32 %v1671_v52, %v750_v48 }
 0x21b   :  { %936 = vst [vmem:[%s1806_s5 + $0xe8] sm:$0xff] %v904_v47 }
 0x21c   :  { %935 = vst [vmem:[%s1806_s5 + $0xe0] sm:$0xff] %v903_v49  ;;  %v1200_v36 = vpop.f32.mrb[30].mxu1 }
 0x21d   :  { %v906_v50 = vadd.f32 %v1200_v36, %v1671_v52  ;;  %v760_v51 = vpop.f32.mrb[31].mxu1 }
 0x21e   :  { %v905_v53 = vadd.f32 %v1671_v52, %v760_v51 }
 0x21f   :  { %938 = vst [vmem:[%s1806_s5 + $0xf8] sm:$0xff] %v906_v50 }
 0x220   :  { %937 = vst [vmem:[%s1806_s5 + $0xf0] sm:$0xff] %v905_v53 }

</bundles_post_ra>
